<compile_context>
chip_gen: v5e
topology: v5e:2x2
jax: 0.10.0
libtpu: 0.0.40
codegen_flags: <defaults>
</compile_context>

<pallas_src>
import functools

import jax
import jax.numpy as jnp
from jax import lax
from jax.experimental import pallas as pl
from jax.experimental.pallas import tpu as pltpu


NEG_INF = -1e30                       # finite -inf: exp() underflows to 0, never NaN
VMEM_LIMIT = 48 * 1024 * 1024         # > v5e 16MiB scoped default, < v7x 64MiB physical


def _pick_tile(dim, cap, align):
    """Largest divisor of `dim` that is <= cap and a multiple of `align`;
    fall back to the full dim (block == full array dim is always legal)."""
    if dim <= cap:
        return dim
    t = (cap // align) * align
    while t >= align:
        if dim % t == 0:
            return t
        t -= align
    return dim


# --------------------------------------------------------------------------
# Tiled linear projection (MXU matmul with K-reduction grid axis)
# --------------------------------------------------------------------------
def _matmul_kernel(x_ref, w_ref, o_ref, acc_ref, *, compute_dtype):
    @pl.when(pl.program_id(2) == 0)
    def _init():
        acc_ref[...] = jnp.zeros_like(acc_ref)

    acc_ref[...] += jnp.dot(
        x_ref[...].astype(compute_dtype),   # no-op when operands already bf16
        w_ref[...].astype(compute_dtype),
        preferred_element_type=jnp.float32,
    )

    @pl.when(pl.program_id(2) == pl.num_programs(2) - 1)
    def _done():
        o_ref[...] = acc_ref[...].astype(o_ref.dtype)


def pallas_linear(x, w, *, compute_dtype=jnp.bfloat16, out_dtype=None,
                  block_m=512, block_n=512, block_k=512):
    """y = x @ w  (w is the torch weight already transposed: (in, out))."""
    M, K = x.shape
    K2, N = w.shape
    assert K == K2
    out_dtype = x.dtype if out_dtype is None else out_dtype
    tm = _pick_tile(M, block_m, 8)
    tn = _pick_tile(N, block_n, 128)
    tk = _pick_tile(K, block_k, 128)
    # v7x has 2 TensorCores sharded over the parallel grid axes: keep >= 2 tiles.
    if (M // tm) * (N // tn) < 2:
        if tm % 16 == 0:
            tm //= 2
        elif tn % 256 == 0:
            tn //= 2
    grid = (M // tm, N // tn, K // tk)

    kernel = functools.partial(_matmul_kernel, compute_dtype=compute_dtype)
    return pl.pallas_call(
        kernel,
        out_shape=jax.ShapeDtypeStruct((M, N), out_dtype),
        grid_spec=pltpu.PrefetchScalarGridSpec(
            num_scalar_prefetch=0,
            grid=grid,
            in_specs=[
                pl.BlockSpec((tm, tk), lambda i, j, k: (i, k)),
                pl.BlockSpec((tk, tn), lambda i, j, k: (k, j)),
            ],
            out_specs=pl.BlockSpec((tm, tn), lambda i, j, k: (i, j)),
            scratch_shapes=[pltpu.VMEM((tm, tn), jnp.float32)],
        ),
        compiler_params=pltpu.CompilerParams(
            dimension_semantics=("parallel", "parallel", "arbitrary"),
            vmem_limit_bytes=VMEM_LIMIT),
    )(x, w)


# --------------------------------------------------------------------------
# Flash-attention with grok soft-cap (online softmax, grouped GQA heads)
# --------------------------------------------------------------------------
def _flash_attn_kernel(*refs, n_rep, head_dim, block_q, block_kv,
                       scale_over_cap, cap, causal, use_mask,
                       compute_dtype, approx_recip):
    if use_mask:
        q_ref, k_ref, v_ref, mask_ref, o_ref, q_scr, m_scr, l_scr, acc_scr = refs
    else:
        q_ref, k_ref, v_ref, o_ref, q_scr, m_scr, l_scr, acc_scr = refs
        mask_ref = None

    qi = pl.program_id(2)
    ki = pl.program_id(3)
    D = head_dim
    rows = n_rep * block_q              # all query heads of the kv group, stacked

    @pl.when(ki == 0)
    def _init():
        # Cache the (mult/cap)-pre-scaled q tile once per q block, head-major:
        #   row r = h*block_q + t  <->  (query head h of this group, position t)
        q_full = q_ref[0]                                       # (tq, n_rep*D)
        for h in range(n_rep):
            q_h = q_full[:, h * D:(h + 1) * D]
            q_scr[h * block_q:(h + 1) * block_q, :] = (
                q_h * scale_over_cap).astype(compute_dtype)
        m_scr[...] = jnp.full_like(m_scr, NEG_INF)
        l_scr[...] = jnp.zeros_like(l_scr)
        acc_scr[...] = jnp.zeros_like(acc_scr)

    def _compute(apply_causal_mask):
        k = k_ref[0].astype(compute_dtype)                      # (tkv, D)
        v = v_ref[0].astype(compute_dtype)                      # (tkv, D)
        # scores = (q*mult/cap) @ k^T, contracting last axes (no k.T copy)
        s = lax.dot_general(q_scr[...], k, (((1,), (1,)), ((), ())),
                            preferred_element_type=jnp.float32)  # (rows, tkv)
        s = cap * jnp.tanh(s)                                   # grok soft-cap
        if use_mask:
            mt = mask_ref[0, 0].astype(jnp.float32)             # (tq, tkv) shared by group
            if n_rep > 1:
                mt = jnp.tile(mt, (n_rep, 1))
            s = s + mt
        if apply_causal_mask:
            q_pos = qi * block_q + (
                lax.broadcasted_iota(jnp.int32, (rows, block_kv), 0) % block_q)
            k_pos = ki * block_kv + lax.broadcasted_iota(
                jnp.int32, (rows, block_kv), 1)
            s = jnp.where(q_pos >= k_pos, s, NEG_INF)

        m_prev = m_scr[...]                                     # (rows, 1)
        m_new = jnp.maximum(m_prev, jnp.max(s, axis=-1, keepdims=True))
        alpha = jnp.exp(m_prev - m_new)
        p = jnp.exp(s - m_new)
        l_scr[...] = alpha * l_scr[...] + jnp.sum(p, axis=-1, keepdims=True)
        acc_scr[...] = alpha * acc_scr[...] + lax.dot_general(
            p.astype(compute_dtype), v, (((1,), (0,)), ((), ())),
            preferred_element_type=jnp.float32)
        m_scr[...] = m_new

    if causal:
        q_lo = qi * block_q
        k_lo = ki * block_kv
        not_skipped = k_lo <= q_lo + (block_q - 1)       # some k_pos <= some q_pos
        straddles = (k_lo + block_kv - 1) > q_lo         # some k_pos >  some q_pos

        @pl.when(jnp.logical_and(not_skipped, straddles))
        def _():
            _compute(True)                               # diagonal tile: mask needed

        @pl.when(jnp.logical_and(not_skipped, jnp.logical_not(straddles)))
        def _():
            _compute(False)                              # interior tile: fast path
    else:
        _compute(False)

    @pl.when(ki == pl.num_programs(3) - 1)
    def _done():
        l = l_scr[...]
        l = jnp.where(l == 0.0, 1.0, l)                  # guard fully-masked rows
        out = acc_scr[...] * pl.reciprocal(l, approx=approx_recip)   # (rows, D) f32
        for h in range(n_rep):
            o_ref[:, :, h * D:(h + 1) * D] = (
                out[h * block_q:(h + 1) * block_q, :][None].astype(o_ref.dtype))


def _xla_attention_fallback(q, k, v, *, head_dim, mask, causal, n_rep,
                            attn_output_multiplier, max_attn_val):
    # TODO(synk): head_dim not a multiple of 128 is not lane-dense; fall back to
    # plain XLA attention instead of a misaligned Pallas kernel.
    B, S, QD = q.shape
    D = head_dim
    Hq, Hkv = QD // D, k.shape[-1] // D
    qh = q.reshape(B, S, Hq, D).transpose(0, 2, 1, 3).astype(jnp.float32)
    kh = k.reshape(B, S, Hkv, D).transpose(0, 2, 1, 3).astype(jnp.float32)
    vh = v.reshape(B, S, Hkv, D).transpose(0, 2, 1, 3).astype(jnp.float32)
    kh = jnp.repeat(kh, n_rep, axis=1)
    vh = jnp.repeat(vh, n_rep, axis=1)
    s = jnp.einsum("bhqd,bhkd->bhqk", qh, kh) * attn_output_multiplier
    s = max_attn_val * jnp.tanh(s / max_attn_val)
    if mask is not None:
        s = s + mask.astype(jnp.float32)
    if causal:
        cm = jnp.tril(jnp.ones((S, S), dtype=bool))
        s = jnp.where(cm[None, None], s, NEG_INF)
    p = jax.nn.softmax(s, axis=-1)
    o = jnp.einsum("bhqk,bhkd->bhqd", p, vh)
    return o.transpose(0, 2, 1, 3).reshape(B, S, Hq * D).astype(q.dtype)


def pallas_flash_attention(q, k, v, *, head_dim, mask=None, causal=False,
                           attn_output_multiplier=1.0, max_attn_val=30.0,
                           compute_dtype=None, approx_recip=None,
                           block_q=256, block_kv=512):
    """q: (B, S, Hq*D); k, v: (B, S, Hkv*D); mask: (B, 1, S, S) additive or None.
    Returns (B, S, Hq*D) in q.dtype — already in the layout o_proj consumes."""
    B, S, QD = q.shape
    D = head_dim
    Hq, Hkv = QD // D, k.shape[-1] // D
    n_rep = Hq // Hkv
    assert Hq * D == QD and Hkv * D == k.shape[-1] and Hkv * n_rep == Hq
    assert k.shape[:2] == (B, S) and v.shape == k.shape

    cd = q.dtype if compute_dtype is None else compute_dtype
    if approx_recip is None:
        approx_recip = jnp.dtype(cd) != jnp.dtype(jnp.float32)

    if D % 128 != 0:
        return _xla_attention_fallback(
            q, k, v, head_dim=D, mask=mask, causal=causal, n_rep=n_rep,
            attn_output_multiplier=attn_output_multiplier,
            max_attn_val=max_attn_val)

    # Keep the grouped score tile (n_rep*tq, tkv) to a few MiB.
    tq_target = min(block_q, max(8, (512 // max(n_rep, 1)) // 8 * 8))
    tq = _pick_tile(S, tq_target, 8)
    tkv = _pick_tile(S, block_kv, 128 if mask is not None else 8)
    n_q, n_kv = S // tq, S // tkv
    rows = n_rep * tq
    use_mask = mask is not None
    if use_mask:
        # Finite clamp + compute-dtype mask: halves mask DMA on the bf16 path and
        # keeps exp() finite for fully-masked rows.
        mask = jnp.maximum(mask, NEG_INF).astype(cd)

    kernel = functools.partial(
        _flash_attn_kernel,
        n_rep=n_rep, head_dim=D, block_q=tq, block_kv=tkv,
        scale_over_cap=float(attn_output_multiplier) / float(max_attn_val),
        cap=float(max_attn_val),
        causal=causal, use_mask=use_mask,
        compute_dtype=cd, approx_recip=bool(approx_recip),
    )

    def q_map(b, g, i, j):
        return (b, i, g)

    def kv_map(b, g, i, j):
        if causal:
            # Clamp skipped kv tiles to the last useful tile so their DMA is elided.
            j = jnp.minimum(j, ((i + 1) * tq - 1) // tkv)
        return (b, j, g)                  # GQA: one K/V fetch per kv group

    def mask_map(b, g, i, j):
        if causal:
            j = jnp.minimum(j, ((i + 1) * tq - 1) // tkv)
        return (b, 0, i, j)

    in_specs = [
        pl.BlockSpec((1, tq, n_rep * D), q_map),
        pl.BlockSpec((1, tkv, D), kv_map),
        pl.BlockSpec((1, tkv, D), kv_map),
    ]
    inputs = [q, k, v]
    if use_mask:
        in_specs.append(pl.BlockSpec((1, 1, tq, tkv), mask_map))
        inputs.append(mask)

    return pl.pallas_call(
        kernel,
        out_shape=jax.ShapeDtypeStruct((B, S, Hq * D), q.dtype),
        grid_spec=pltpu.PrefetchScalarGridSpec(
            num_scalar_prefetch=0,
            grid=(B, Hkv, n_q, n_kv),
            in_specs=in_specs,
            out_specs=pl.BlockSpec((1, tq, n_rep * D), q_map),
            scratch_shapes=[
                pltpu.VMEM((rows, D), cd),          # pre-scaled q (head-major rows)
                pltpu.VMEM((rows, 1), jnp.float32),  # running max
                pltpu.VMEM((rows, 1), jnp.float32),  # running sum
                pltpu.VMEM((rows, D), jnp.float32),  # output accumulator
            ],
        ),
        compiler_params=pltpu.CompilerParams(
            dimension_semantics=("parallel", "parallel", "parallel", "arbitrary"),
            vmem_limit_bytes=VMEM_LIMIT),
    )(*inputs)


# --------------------------------------------------------------------------
# Plain-JAX glue (RoPE, reshapes, parameter setup)
# --------------------------------------------------------------------------
def rotate_half(x):
    x1 = x[..., : x.shape[-1] // 2]
    x2 = x[..., x.shape[-1] // 2:]
    return jnp.concatenate([-x2, x1], axis=-1)


def rotary_cos_sin(head_dim, seq_len, base=10000.0):
    inv_freq = 1.0 / (base ** (jnp.arange(0, head_dim, 2, dtype=jnp.float32) / head_dim))
    t = jnp.arange(seq_len, dtype=jnp.float32)
    freqs = jnp.outer(t, inv_freq)
    emb = jnp.concatenate([freqs, freqs], axis=-1)
    return jnp.cos(emb), jnp.sin(emb)  # each (seq_len, head_dim), f32


def apply_rotary_pos_emb(q, k, cos, sin, position_ids, unsqueeze_dim=1):
    cos_p = jnp.expand_dims(cos[position_ids], unsqueeze_dim)
    sin_p = jnp.expand_dims(sin[position_ids], unsqueeze_dim)
    q_embed = q * cos_p + rotate_half(q) * sin_p
    k_embed = k * cos_p + rotate_half(k) * sin_p
    return q_embed, k_embed


class MultiHeadAttentionPallas:
    def __init__(self, hidden_size, num_heads, num_key_value_heads=None,
                 max_position_embeddings=2048,
                 attn_output_multiplier=1.0, max_attn_val=30.0,
                 compute_dtype=jnp.bfloat16, approx_softmax_recip=None,
                 block_q=256, block_kv=512,
                 block_m=512, block_n=512, block_k=512, key=None):
        self.hidden_size = hidden_size
        self.num_heads = num_heads
        self.head_dim = hidden_size // num_heads
        if num_key_value_heads is None:
            num_key_value_heads = num_heads
        self.num_key_value_heads = num_key_value_heads
        self.num_key_value_groups = num_heads // num_key_value_heads
        self.attn_output_multiplier = float(attn_output_multiplier)
        self.max_attn_val = float(max_attn_val)
        self.max_position_embeddings = max_position_embeddings
        self.compute_dtype = compute_dtype
        self.approx_softmax_recip = approx_softmax_recip
        self.block_q, self.block_kv = block_q, block_kv
        self.block_m, self.block_n, self.block_k = block_m, block_n, block_k

        key = jax.random.PRNGKey(0) if key is None else key
        kq, kk, kv, ko = jax.random.split(key, 4)
        bound = 1.0 / (hidden_size ** 0.5)

        def init(k_, shape):
            return jax.random.uniform(k_, shape, jnp.float32, -bound, bound)

        # f32 master copies (used by .reference); compute-dtype copies are cached.
        self.wq = init(kq, (hidden_size, num_heads * self.head_dim))
        self.wk = init(kk, (hidden_size, num_key_value_heads * self.head_dim))
        self.wv = init(kv, (hidden_size, num_key_value_heads * self.head_dim))
        self.wo = init(ko, (num_heads * self.head_dim, hidden_size))
        self._param_cache = {}

    def _params(self):
        name = jnp.dtype(self.compute_dtype).name
        if name not in self._param_cache:
            c = self.compute_dtype
            self._param_cache[name] = tuple(
                w.astype(c) for w in (self.wq, self.wk, self.wv, self.wo))
        return self._param_cache[name]

    def __call__(self, hidden_states, attention_mask=None, position_ids=None,
                 is_causal=False):
        bsz, q_len, _ = hidden_states.shape
        hd, nh, nkv = self.head_dim, self.num_heads, self.num_key_value_heads
        cd = self.compute_dtype
        wq, wk, wv, wo = self._params()

        lin = functools.partial(pallas_linear, compute_dtype=cd,
                                block_m=self.block_m, block_n=self.block_n,
                                block_k=self.block_k)

        # bf16 operands: one cast of the activations, weights stored in cd.
        x2d = hidden_states.reshape(bsz * q_len, self.hidden_size).astype(cd)
        q = lin(x2d, wq).reshape(bsz, q_len, nh, hd)     # (B, S, Hq, D) — no transpose
        k = lin(x2d, wk).reshape(bsz, q_len, nkv, hd)
        v = lin(x2d, wv)                                 # stays (B*S, Hkv*D)

        if position_ids is None:
            position_ids = jnp.broadcast_to(jnp.arange(q_len)[None, :], (bsz, q_len))
        cos, sin = rotary_cos_sin(hd, q_len)
        # RoPE on the (B, S, H, D) layout, f32 math, emitted back in compute dtype.
        q, k = apply_rotary_pos_emb(q, k, cos, sin, position_ids, unsqueeze_dim=2)
        q = q.astype(cd).reshape(bsz, q_len, nh * hd)
        k = k.astype(cd).reshape(bsz, q_len, nkv * hd)
        v = v.reshape(bsz, q_len, nkv * hd)

        attn = pallas_flash_attention(
            q, k, v, head_dim=hd, mask=attention_mask, causal=is_causal,
            attn_output_multiplier=self.attn_output_multiplier,
            max_attn_val=self.max_attn_val,
            compute_dtype=cd, approx_recip=self.approx_softmax_recip,
            block_q=self.block_q, block_kv=self.block_kv,
        )  # (B, S, Hq*D), already in the layout o_proj consumes

        out = lin(attn.reshape(bsz * q_len, nh * hd), wo,
                  out_dtype=hidden_states.dtype)
        # TODO(synk): past_key_value / use_cache / output_attentions paths not
        # implemented (cache concat is glue-only; attn weights never materialized).
        return out.reshape(bsz, q_len, self.hidden_size)

    # Pure-JAX reference (full f32 precision) for verification
    def reference(self, hidden_states, attention_mask=None, position_ids=None):
        P = jax.lax.Precision.HIGHEST
        bsz, q_len, _ = hidden_states.shape
        hd, nh, nkv = self.head_dim, self.num_heads, self.num_key_value_heads
        x2d = hidden_states.reshape(bsz * q_len, self.hidden_size)
        q = jnp.dot(x2d, self.wq, precision=P).reshape(bsz, q_len, nh, hd).transpose(0, 2, 1, 3)
        k = jnp.dot(x2d, self.wk, precision=P).reshape(bsz, q_len, nkv, hd).transpose(0, 2, 1, 3)
        v = jnp.dot(x2d, self.wv, precision=P).reshape(bsz, q_len, nkv, hd).transpose(0, 2, 1, 3)
        if position_ids is None:
            position_ids = jnp.broadcast_to(jnp.arange(q_len)[None, :], (bsz, q_len))
        cos, sin = rotary_cos_sin(hd, q_len)
        q, k = apply_rotary_pos_emb(q, k, cos, sin, position_ids, unsqueeze_dim=1)
        n_rep = self.num_key_value_groups
        k = jnp.repeat(k, n_rep, axis=1)
        v = jnp.repeat(v, n_rep, axis=1)
        s = jnp.einsum("bhqd,bhkd->bhqk", q, k, precision=P).astype(jnp.float32)
        s = s * self.attn_output_multiplier
        s = self.max_attn_val * jnp.tanh(s / self.max_attn_val)
        if attention_mask is None:
            attention_mask = jnp.zeros((bsz, 1, q_len, q_len), jnp.float32)
        s = s + attention_mask
        p = jax.nn.softmax(s, axis=-1)
        o = jnp.einsum("bhqk,bhkd->bhqd", p, v, precision=P)
        o = o.transpose(0, 2, 1, 3).reshape(bsz * q_len, nh * hd)
        return jnp.dot(o, self.wo, precision=P).reshape(bsz, q_len, self.hidden_size)


if __name__ == "__main__":
    B, S = 2, 32
    HIDDEN, NUM_HEADS, NUM_KV_HEADS = 256, 2, 1     # head_dim = 128 (lane-dense), n_rep = 2

    key = jax.random.PRNGKey(0)
    k_in, k_params = jax.random.split(key)
    x = jax.random.normal(k_in, (B, S, HIDDEN), jnp.float32)

    neg = jnp.finfo(jnp.float32).min
    causal_mask = jnp.where(jnp.tril(jnp.ones((S, S), bool)), 0.0, neg)
    causal_mask = jnp.broadcast_to(causal_mask[None, None, :, :], (B, 1, S, S))

    mha = MultiHeadAttentionPallas(
        hidden_size=HIDDEN, num_heads=NUM_HEADS, num_key_value_heads=NUM_KV_HEADS,
        attn_output_multiplier=0.08, max_attn_val=30.0,
        compute_dtype=jnp.float32,       # exact path first
        block_q=8, block_kv=8,           # tiny tiles -> exercises online softmax + skipping
        key=k_params,
    )

    ref = mha.reference(x, attention_mask=causal_mask)

    # 1) f32 compute, in-kernel causal mask (multiple kv tiles, masked-tile skip + GQA grouping)
    out_f32_causal = jax.block_until_ready(mha(x, is_causal=True))
    assert out_f32_causal.shape == (B, S, HIDDEN)
    err1 = float(jnp.max(jnp.abs(out_f32_causal - ref)))
    assert jnp.allclose(out_f32_causal, ref, atol=1e-3, rtol=1e-3), f"f32 causal mismatch {err1}"

    # 2) f32 compute, explicit additive-mask path (module's original semantics)
    out_f32_mask = jax.block_until_ready(mha(x, attention_mask=causal_mask))
    err2 = float(jnp.max(jnp.abs(out_f32_mask - ref)))
    assert jnp.allclose(out_f32_mask, ref, atol=1e-3, rtol=1e-3), f"f32 mask mismatch {err2}"

    # 3) bf16 operands end-to-end (production/perf configuration), looser tolerance
    mha.compute_dtype = jnp.bfloat16
    out_bf16 = jax.block_until_ready(mha(x, is_causal=True))
    err3 = float(jnp.max(jnp.abs(out_bf16 - ref)))
    assert jnp.allclose(out_bf16, ref, atol=3e-2, rtol=3e-2), f"bf16 causal mismatch {err3}"

    print("KERNEL_OK")
</pallas_src>

<mosaic_0001>
module attributes {stable_mosaic.version = 11 : i64} {
  func.func @_matmul_kernel(%arg0: i32, %arg1: i32, %arg2: i32, %arg3: memref<32x256xf32, #tpu.memory_space<vmem>>, %arg4: memref<256x256xf32, #tpu.memory_space<vmem>>, %arg5: memref<32x256xf32, #tpu.memory_space<vmem>>, %arg6: memref<32x256xf32, #tpu.memory_space<vmem>>) attributes {dimension_semantics = [#tpu.dimension_semantics<parallel>, #tpu.dimension_semantics<parallel>, #tpu.dimension_semantics<arbitrary>], iteration_bounds = array<i64: 2, 1, 1>, scalar_prefetch = 0 : i64, scratch_operands = 1 : i64, tpu.core_type = #tpu.core_type<tc>, window_params = [{transform_indices = @transform_0, window_bounds = array<i64: 32, 256>}, {transform_indices = @transform_1, window_bounds = array<i64: 256, 256>}, {transform_indices = @transform_2, window_bounds = array<i64: 32, 256>}]} {
    %c0_i32 = arith.constant 0 : i32
    %0 = arith.cmpi eq, %arg2, %c0_i32 : i32
    %1 = arith.extui %0 : i1 to i32
    %c0_i32_0 = arith.constant 0 : i32
    %2 = arith.cmpi ne, %1, %c0_i32_0 : i32
    scf.if %2 {
      %cst_10 = arith.constant 0.000000e+00 : f32
      %12 = vector.broadcast %cst_10 : f32 to vector<32x256xf32>
      %c0_11 = arith.constant 0 : index
      %c0_12 = arith.constant 0 : index
      %13 = vector.load %arg6[%c0_11, %c0_12] : memref<32x256xf32, #tpu.memory_space<vmem>>, vector<32x256xf32>
      tpu.vector_store %arg6[%c0_11, %c0_12], %12 {strides = array<i32>} : memref<32x256xf32, #tpu.memory_space<vmem>>, vector<32x256xf32>,
    } else {
    }
    %c0 = arith.constant 0 : index
    %c0_1 = arith.constant 0 : index
    %3 = vector.load %arg6[%c0, %c0_1] : memref<32x256xf32, #tpu.memory_space<vmem>>, vector<32x256xf32>
    %c0_2 = arith.constant 0 : index
    %c0_3 = arith.constant 0 : index
    %4 = vector.load %arg3[%c0_2, %c0_3] : memref<32x256xf32, #tpu.memory_space<vmem>>, vector<32x256xf32>
    %c0_4 = arith.constant 0 : index
    %c0_5 = arith.constant 0 : index
    %5 = vector.load %arg4[%c0_4, %c0_5] : memref<256x256xf32, #tpu.memory_space<vmem>>, vector<256x256xf32>
    %cst = arith.constant dense<0.000000e+00> : vector<32x256xf32>
    %6 = tpu.matmul %4, %5, %cst {dimension_numbers = #tpu.dot_dimension_numbers<[1], [0], [0], [1], [0, 0, 1, 1], [], []>} : vector<32x256xf32>, vector<256x256xf32>, vector<32x256xf32> -> vector<32x256xf32>
    %7 = arith.addf %3, %6 : vector<32x256xf32>
    %c0_6 = arith.constant 0 : index
    %c0_7 = arith.constant 0 : index
    %8 = vector.load %arg6[%c0_6, %c0_7] : memref<32x256xf32, #tpu.memory_space<vmem>>, vector<32x256xf32>
    tpu.vector_store %arg6[%c0_6, %c0_7], %7 {strides = array<i32>} : memref<32x256xf32, #tpu.memory_space<vmem>>, vector<32x256xf32>,
    %c0_i32_8 = arith.constant 0 : i32
    %9 = arith.cmpi eq, %arg2, %c0_i32_8 : i32
    %10 = arith.extui %9 : i1 to i32
    %c0_i32_9 = arith.constant 0 : i32
    %11 = arith.cmpi ne, %10, %c0_i32_9 : i32
    scf.if %11 {
      %c0_10 = arith.constant 0 : index
      %c0_11 = arith.constant 0 : index
      %12 = vector.load %arg6[%c0_10, %c0_11] : memref<32x256xf32, #tpu.memory_space<vmem>>, vector<32x256xf32>
      %c0_12 = arith.constant 0 : index
      %c0_13 = arith.constant 0 : index
      %13 = vector.load %arg5[%c0_12, %c0_13] : memref<32x256xf32, #tpu.memory_space<vmem>>, vector<32x256xf32>
      tpu.vector_store %arg5[%c0_12, %c0_13], %12 {strides = array<i32>} : memref<32x256xf32, #tpu.memory_space<vmem>>, vector<32x256xf32>,
    } else {
    }
    return
  }
  func.func @transform_0(%arg0: i32, %arg1: i32, %arg2: i32) -> (i32, i32) {
    %c0_i32 = arith.constant 0 : i32
    return %arg0, %arg2 : i32, i32
  }
  func.func @transform_1(%arg0: i32, %arg1: i32, %arg2: i32) -> (i32, i32) {
    %c0_i32 = arith.constant 0 : i32
    return %arg2, %arg1 : i32, i32
  }
  func.func @transform_2(%arg0: i32, %arg1: i32, %arg2: i32) -> (i32, i32) {
    %c0_i32 = arith.constant 0 : i32
    return %arg0, %arg1 : i32, i32
  }
}

</mosaic_0001>

<bundles_post_ra>
// kernel: tpu_custom_call.1
= control target key start
LH: loop header
LB: loop body
LE: loop exit
PB: predicated region body
PF: predicated region fallthrough
CT: control target
= control target key end

     0   :  { %7 = vsyncpa [#allocation4], 0  ;;  %s1041_s0 = inlined_call_operand.hbm [shape: f32[64,256], index: 0, kind: input, shape index: {}]   ;;  %s1042_s1 = inlined_call_operand.hbm [shape: f32[256,256], index: 1, kind: input, shape index: {}]   ;;  %s1043_s2 = inlined_call_operand.hbm [shape: f32[64,256], index: 2, kind: output, shape index: {}]  }
   0x1   :  { %9 = vsyncpa [#allocation4 + $0x1], 0 }
   0x2   :  { %10 = vsyncpa [#allocation7], 0 }
   0x3   :  { %11 = vsyncpa [#allocation5], 0 }
   0x4   :  { %13 = vsyncpa [#allocation5 + $0x1], 0  ;;  %s861_s9 = smov 0   ;;  %s863_s10 = smov 0  }
   0x5   :  { %s865_s11 = smov 0   ;;  %s867_s12 = smov 0  }
   0x6   :  { %s869_s13 = smov 0   ;;  %s871_s14 = smov 0  }
   0x7 LB: > { %s593_s15 = sadd.s32 4294967295, %s839_s14   ;;  %s594_s16 = sadd.s32 4294967294, %s839_s14   ;;  %s839_s14 = sphi %s871_s14, %s19_s14   ;;  %s835_s13 = sphi %s869_s13, %s1055_s13   ;;  %s831_s12 = sphi %s867_s12, %s1054_s12   ;;  %s827_s11 = sphi %s865_s11, %s1053_s11   ;;  %s823_s10 = sphi %s863_s10, %s1052_s10   ;;  %s819_s9 = sphi %s861_s9, %s1051_s9  }
   0x8   : > { %p60_p0 = scmp.ne.s32.totalorder %s823_s10, %s819_s9  ;;  %p895_p1 = scmp.eq.s32.totalorder %s593_s15, 0 }
   0x9   : > { %p899_p2 = scmp.eq.s32.totalorder %s593_s15, 1  ;;  %p120_p3 = scmp.eq.s32.totalorder %s594_s16, 1 }
   0xa   : > { %p905_p4 = por %p895_p1, %p60_p0  ;;  %p595_p5 = scmp.ge.s32.totalorder %s839_s14, 1 }
   0xb   : > { %p910_p6 = por %p120_p3, %p60_p0  ;;  %p127_p7 = scmp.lt.s32.totalorder %s839_s14, 3 }
   0xc   : > { %s144_s23 = sshll.u32 %s1042_s1, 4  ;;  %s841_s25 = smov [#allocation6]   ;;  %s145_s23 = int_to_ptr.hbm [resolvable:$true] %s144_s23 }
   0xd   : > { %p918_p8 = pnand %p595_p5, %p127_p7  ;;  %s146_s26 = sshll.u32 %s841_s25, 4  ;;  %s147_s26 = int_to_ptr.vmem [resolvable:$true] %s146_s26 }
   0xe   : > { %p597_p11 = scmp.ge.s32.totalorder %s839_s14, 2  ;;  %s842_s27 = smov 256  }
   0xf   : > { %p624_p9 = pneg %p918_p8  ;;  %s843_s28 = smov 16  }
  0x10   : > { %s38_s29 = sadd.s32 1, %s835_s13  ;;  %s47_s30 = sadd.s32 1, %s827_s11 }
  0x11   : > { %p625_p10 = pnand %p624_p9, %p895_p1  ;;  %p40_p12 = scmp.ge.s32.totalorder %s38_s29, 2 }
  0x12   : > { %p54_p13 = scmp.ne.s32.totalorder %s827_s11, %s823_s10  ;;  %p55_p0 = scmp.eq.s32.totalorder %s839_s14, 0 }
  0x13   : > { %627 = dma.hbm_to_vmem [thread:$0]  (!%p625_p10), %s145_s23, 8192, %s147_s26, [#allocation7], %s842_s27, %s842_s27, %s843_s28  }
  0x14   : > { %s1057_s29 = smov (%p40_p12, %s38_s29), 0  ;;  %p937_p3 = por %p55_p0, %p54_p13 }
  0x15   : > { %p943_p5 = por %p899_p2, %p54_p13  ;;  %s42_s5 = ssub.s32 %s835_s13, %s1057_s29 }
  0x16   : > { %p637_p7 = scmp.lt.s32.totalorder %s839_s14, 2  ;;  %p45_p9 = scmp.eq.s32.totalorder %s42_s5, 0 }
  0x17   : > { %s160_s6 = sand.u32 1, %s827_s11   ;;  %s613_s15 = sshll.u32 %s835_s13, 6 }
  0x18   : > { %s598_s7 = sshll.u32 %s160_s6, 6  ;;  %s172_s22 = scalar_lea.hbm %s1041_s0, %s613_s15 }
  0x19   : > { %s952_s8 = scalar_select %p45_p9, %s827_s11, %s47_s30  }
  0x1a   : > { %s164_s23 = scalar_lea.vmem [#allocation3], %s598_s7  ;;  %s173_s18 = sshll.u32 %s172_s22, 4  ;;  %s174_s18 = int_to_ptr.hbm [resolvable:$true] %s173_s18 }
  0x1b   : > { %s175_s25 = sshll.u32 %s164_s23, 4  ;;  %p629_p2 = pnand %p637_p7, %p937_p3  ;;  %s176_s25 = int_to_ptr.vmem [resolvable:$true] %s175_s25 }
  0x1c   : > { %s161_s26 = scalar_lea.sflag [#allocation4], %s160_s6  ;;  %187 = sbr.rel (%p918_p8) target bundleno = 231 (0xe7), region = 28 }
  0x1d   : > { %631 = dma.hbm_to_vmem [thread:$0]  (!%p629_p2), %s174_s18, 1024, %s176_s25, %s161_s26, %s842_s27, %s842_s27, %s843_s28  }
  0x1e   : > { %s966_s30 = sand.u32 (!%p918_p8), 1, %s823_s10  }
  0x1f   : > { %s603_s5 = sshll.u32 (!%p918_p8), %s966_s30, 6  ;;  %s190_s7 = scalar_lea.sflag (!%p918_p8), [#allocation4], %s966_s30 }
  0x20   : > { %s972_s3 = scalar_lea.vmem (!%p918_p8), [#allocation3], %s603_s5 }
  0x21   : > { %806 = dma.done.wait (%p905_p4), %s190_s7, 1024  }
  0x22   : > { %808 = vsyncadd (%p905_p4), %s190_s7, 4294966272 }
  0x23   : > { %810 = dma.done.wait (%p895_p1), [#allocation7], 8192  }
  0x24   : > { %812 = vsyncadd (%p895_p1), [#allocation7], 4294959104  ;;  %v285_v0 = vld [vmem:[#allocation6 + $0xf8] sm:$0xff]  ;;  %v283_v2 = vld [vmem:[#allocation6 + $0xe8] sm:$0xff]  ;;  %s992_s17 = scalar_lea.vmem [#allocation8], %s603_s5  ;;  %s615_s19 = sshll.u32 %s831_s12, 6 }
  0x25   : > { %v317_v1 = vld [vmem:[#allocation6 + $0x1f8] sm:$0xff]  ;;  %376 = vmatpush.msra.mxu2 %v285_v0  ;;  %v315_v3 = vld [vmem:[#allocation6 + $0x1e8] sm:$0xff]  ;;  %v284_v6 = vld [vmem:[#allocation6 + $0xf0] sm:$0xff]  ;;  %s484_s28 = scalar_lea.hbm %s1043_s2, %s615_s19  ;;  %s485_s6 = sshll.u32 %s992_s17, 4  ;;  %s486_s6 = int_to_ptr.vmem [resolvable:$true] %s485_s6 }
  0x26   : > { %405 = vmatpush.msra.mxu3 %v317_v1  ;;  %v281_v4 = vld [vmem:[#allocation6 + $0xd8] sm:$0xff]  ;;  %v316_v7 = vld [vmem:[#allocation6 + $0x1f0] sm:$0xff]  ;;  %v282_v8 = vld [vmem:[#allocation6 + $0xe0] sm:$0xff]  ;;  %318 = vmatpush.msra.mxu0 %v284_v6  ;;  %s487_s15 = sshll.u32 %s484_s28, 4  ;;  %s470_s12 = scalar_lea.sflag [#allocation5], %s966_s30  ;;  %s488_s15 = int_to_ptr.hbm [resolvable:$true] %s487_s15 }
  0x27   : > { %v313_v5 = vld [vmem:[#allocation6 + $0x1d8] sm:$0xff]  ;;  %377 = vmatpush.msra.mxu2 %v283_v2  ;;  %v314_v9 = vld [vmem:[#allocation6 + $0x1e0] sm:$0xff]  ;;  %347 = vmatpush.msra.mxu1 %v316_v7  ;;  %v279_v10 = vld [vmem:[#allocation6 + $0xc8] sm:$0xff]  ;;  %s767_s16 = sshra.s32 %s488_s15, 4  ;;  %s773_s25 = scalar_lea.hbm %s1043_s2, 128  ;;  %s768_s16 = int_to_ptr.hbm [resolvable:$true] %s767_s16 }
  0x28   : > { %406 = vmatpush.msra.mxu3 %v315_v3  ;;  %v311_v11 = vld [vmem:[#allocation6 + $0x1c8] sm:$0xff]  ;;  %v280_v12 = vld [vmem:[#allocation6 + $0xd0] sm:$0xff]  ;;  %319 = vmatpush.msra.mxu0 %v282_v8  ;;  %v277_v14 = vld [vmem:[#allocation6 + $0xb8] sm:$0xff]  ;;  %s769_s21 = scalar_lea.hbm %s768_s16, 64  ;;  %p774_p10 = scmp.lt.s32.totalorder %s768_s16, %s1043_s2 }
  0x29   : > { %378 = vmatpush.msra.mxu2 %v281_v4  ;;  %v312_v13 = vld [vmem:[#allocation6 + $0x1d0] sm:$0xff]  ;;  %348 = vmatpush.msra.mxu1 %v314_v9  ;;  %v309_v15 = vld [vmem:[#allocation6 + $0x1b8] sm:$0xff]  ;;  %v278_v16 = vld [vmem:[#allocation6 + $0xc0] sm:$0xff]  ;;  %p770_p1 = scmp.ne.s32.totalorder %s768_s16, %s769_s21  ;;  %p775_p12 = scmp.lt.s32.totalorder %s773_s25, %s769_s21 }
  0x2a   : > { %407 = vmatpush.msra.mxu3 %v313_v5  ;;  %v310_v17 = vld [vmem:[#allocation6 + $0x1c0] sm:$0xff]  ;;  %320 = vmatpush.msra.mxu0 %v280_v12  ;;  %v275_v18 = vld [vmem:[#allocation6 + $0xa8] sm:$0xff]  ;;  %v276_v20 = vld [vmem:[#allocation6 + $0xb0] sm:$0xff] }
  0x2b   : > { %379 = vmatpush.msra.mxu2 %v279_v10  ;;  %349 = vmatpush.msra.mxu1 %v312_v13  ;;  %v307_v19 = vld [vmem:[#allocation6 + $0x1a8] sm:$0xff]  ;;  %v308_v21 = vld [vmem:[#allocation6 + $0x1b0] sm:$0xff]  ;;  %v273_v22 = vld [vmem:[#allocation6 + $0x98] sm:$0xff]  ;;  %p771_p4 = pnand %p770_p1, %p943_p5  ;;  %p776_p13 = por %p775_p12, %p774_p10 }
  0x2c   : > { %408 = vmatpush.msra.mxu3 %v311_v11  ;;  %321 = vmatpush.msra.mxu0 %v278_v16  ;;  %v305_v23 = vld [vmem:[#allocation6 + $0x198] sm:$0xff]  ;;  %v274_v24 = vld [vmem:[#allocation6 + $0xa0] sm:$0xff]  ;;  %v271_v26 = vld [vmem:[#allocation6 + $0x88] sm:$0xff] }
  0x2d   : > { %380 = vmatpush.msra.mxu2 %v277_v14  ;;  %350 = vmatpush.msra.mxu1 %v310_v17  ;;  %v306_v25 = vld [vmem:[#allocation6 + $0x1a0] sm:$0xff]  ;;  %v303_v27 = vld [vmem:[#allocation6 + $0x188] sm:$0xff]  ;;  %v272_v28 = vld [vmem:[#allocation6 + $0x90] sm:$0xff]  ;;  %p772_p8 = pneg %p771_p4 }
  0x2e   : > { %409 = vmatpush.msra.mxu3 %v309_v15  ;;  %322 = vmatpush.msra.mxu0 %v276_v20  ;;  %v304_v29 = vld [vmem:[#allocation6 + $0x190] sm:$0xff]  ;;  %v269_v30 = vld [vmem:[#allocation6 + $0x78] sm:$0xff]  ;;  %v270_v32 = vld [vmem:[#allocation6 + $0x80] sm:$0xff] }
  0x2f   : > { %381 = vmatpush.msra.mxu2 %v275_v18  ;;  %351 = vmatpush.msra.mxu1 %v308_v21  ;;  %v301_v31 = vld [vmem:[#allocation6 + $0x178] sm:$0xff]  ;;  %v302_v33 = vld [vmem:[#allocation6 + $0x180] sm:$0xff]  ;;  %v267_v34 = vld [vmem:[#allocation6 + $0x68] sm:$0xff]  ;;  %p777_p0 = pnand %p776_p13, %p772_p8 }
  0x30   : > { %410 = vmatpush.msra.mxu3 %v307_v19  ;;  %323 = vmatpush.msra.mxu0 %v274_v24  ;;  %v299_v35 = vld [vmem:[#allocation6 + $0x168] sm:$0xff]  ;;  %v268_v36 = vld [vmem:[#allocation6 + $0x70] sm:$0xff]  ;;  %v265_v38 = vld [vmem:[#allocation6 + $0x58] sm:$0xff] }
  0x31   : > { %382 = vmatpush.msra.mxu2 %v273_v22  ;;  %352 = vmatpush.msra.mxu1 %v306_v25  ;;  %v300_v37 = vld [vmem:[#allocation6 + $0x170] sm:$0xff]  ;;  %v297_v39 = vld [vmem:[#allocation6 + $0x158] sm:$0xff]  ;;  %v266_v40 = vld [vmem:[#allocation6 + $0x60] sm:$0xff] }
  0x32   : > { %411 = vmatpush.msra.mxu3 %v305_v23  ;;  %324 = vmatpush.msra.mxu0 %v272_v28  ;;  %v298_v41 = vld [vmem:[#allocation6 + $0x160] sm:$0xff]  ;;  %v263_v42 = vld [vmem:[#allocation6 + $0x48] sm:$0xff]  ;;  %v264_v44 = vld [vmem:[#allocation6 + $0x50] sm:$0xff] }
  0x33   : > { %383 = vmatpush.msra.mxu2 %v271_v26  ;;  %353 = vmatpush.msra.mxu1 %v304_v29  ;;  %v295_v43 = vld [vmem:[#allocation6 + $0x148] sm:$0xff]  ;;  %v296_v45 = vld [vmem:[#allocation6 + $0x150] sm:$0xff]  ;;  %v261_v46 = vld [vmem:[#allocation6 + $0x38] sm:$0xff] }
  0x34   : > { %412 = vmatpush.msra.mxu3 %v303_v27  ;;  %325 = vmatpush.msra.mxu0 %v270_v32  ;;  %v293_v47 = vld [vmem:[#allocation6 + $0x138] sm:$0xff]  ;;  %v262_v48 = vld [vmem:[#allocation6 + $0x40] sm:$0xff]  ;;  %v259_v50 = vld [vmem:[#allocation6 + $0x28] sm:$0xff] }
  0x35   : > { %384 = vmatpush.msra.mxu2 %v269_v30  ;;  %354 = vmatpush.msra.mxu1 %v302_v33  ;;  %v294_v49 = vld [vmem:[#allocation6 + $0x140] sm:$0xff]  ;;  %v291_v51 = vld [vmem:[#allocation6 + $0x128] sm:$0xff]  ;;  %v260_v52 = vld [vmem:[#allocation6 + $0x30] sm:$0xff] }
  0x36   : > { %413 = vmatpush.msra.mxu3 %v301_v31  ;;  %326 = vmatpush.msra.mxu0 %v268_v36  ;;  %v292_v53 = vld [vmem:[#allocation6 + $0x130] sm:$0xff]  ;;  %v257_v54 = vld [vmem:[#allocation6 + $0x18] sm:$0xff]  ;;  %v258_v56 = vld [vmem:[#allocation6 + $0x20] sm:$0xff] }
  0x37   : > { %385 = vmatpush.msra.mxu2 %v267_v34  ;;  %355 = vmatpush.msra.mxu1 %v300_v37  ;;  %v289_v55 = vld [vmem:[#allocation6 + $0x118] sm:$0xff]  ;;  %v290_v57 = vld [vmem:[#allocation6 + $0x120] sm:$0xff]  ;;  %v255_v58 = vld [vmem:[#allocation6 + $0x8] sm:$0xff] }
  0x38   : > { %414 = vmatpush.msra.mxu3 %v299_v35  ;;  %327 = vmatpush.msra.mxu0 %v266_v40  ;;  %v287_v59 = vld [vmem:[#allocation6 + $0x108] sm:$0xff]  ;;  %v246_v60 = vld [vmem:[%s972_s3] sm:$0xff]  ;;  %v256_v62 = vld [vmem:[#allocation6 + $0x10] sm:$0xff] }
  0x39   : > { %386 = vmatpush.msra.mxu2 %v265_v38  ;;  %356 = vmatpush.msra.mxu1 %v298_v41  ;;  %v247_v61 = vld [vmem:[%s972_s3 + $0x8] sm:$0xff]  ;;  %v288_v63 = vld [vmem:[#allocation6 + $0x110] sm:$0xff]  ;;  %v254_v0 = vld [vmem:[#allocation6] sm:$0xff] }
  0x3a   : > { %415 = vmatpush.msra.mxu3 %v297_v39  ;;  %328 = vmatpush.msra.mxu0 %v264_v44  ;;  %v286_v1 = vld [vmem:[#allocation6 + $0x100] sm:$0xff]  ;;  %v248_v2 = vld [vmem:[%s972_s3 + $0x10] sm:$0xff]  ;;  %v249_v3 = vld [vmem:[%s972_s3 + $0x18] sm:$0xff] }
  0x3b   : > { %387 = vmatpush.msra.mxu2 %v263_v42  ;;  %357 = vmatpush.msra.mxu1 %v296_v45  ;;  %v250_v4 = vld [vmem:[%s972_s3 + $0x20] sm:$0xff]  ;;  %v251_v5 = vld [vmem:[%s972_s3 + $0x28] sm:$0xff]  ;;  %v252_v6 = vld [vmem:[%s972_s3 + $0x30] sm:$0xff] }
  0x3c   : > { %416 = vmatpush.msra.mxu3 %v295_v43  ;;  %329 = vmatpush.msra.mxu0 %v262_v48  ;;  %v253_v7 = vld [vmem:[%s972_s3 + $0x38] sm:$0xff] }
  0x3d   : > { %388 = vmatpush.msra.mxu2 %v261_v46  ;;  %358 = vmatpush.msra.mxu1 %v294_v49 }
  0x3e   : > { %417 = vmatpush.msra.mxu3 %v293_v47  ;;  %330 = vmatpush.msra.mxu0 %v260_v52 }
  0x3f   : > { %389 = vmatpush.msra.mxu2 %v259_v50  ;;  %359 = vmatpush.msra.mxu1 %v292_v53 }
  0x40   : > { %418 = vmatpush.msra.mxu3 %v291_v51  ;;  %331 = vmatpush.msra.mxu0 %v258_v56 }
  0x41   : > { %390 = vmatpush.msra.mxu2 %v257_v54  ;;  %360 = vmatpush.msra.mxu1 %v290_v57 }
  0x42   : > { %419 = vmatpush.msra.mxu3 %v289_v55  ;;  %332 = vmatpush.msra.mxu0 %v256_v62 }
  0x43   : > { %391 = vmatpush.msra.mxu2 %v255_v58  ;;  %361 = vmatpush.msra.mxu1 %v288_v63 }
  0x44   : > { %420 = vmatpush.msra.mxu3 %v287_v59  ;;  %392 = vmatmul.f32.vlgmr.msra.gmra.mxu2 %v246_v60 }
  0x45   : > { %421 = vmatmul.f32.vlgmr.msra.gmra.mxu3 %v247_v61  ;;  %333 = vmatpush.msra.mxu0 %v254_v0 }
  0x46   : > { %362 = vmatpush.msra.mxu1 %v286_v1  ;;  %334 = vmatmul.f32.vlgmr.msra.gmra.mxu0 %v246_v60 }
  0x47   : > { %363 = vmatmul.f32.vlgmr.msra.gmra.mxu1 %v247_v61 }
  0x4c   : > { %395 = vmatmul.f32.gmra.mxu2 %v248_v2 }
  0x4d   : > { %424 = vmatmul.f32.gmra.mxu3 %v249_v3 }
  0x4e   : > { %337 = vmatmul.f32.gmra.mxu0 %v248_v2 }
  0x4f   : > { %366 = vmatmul.f32.gmra.mxu1 %v249_v3 }
  0x54   : > { %398 = vmatmul.f32.gmra.mxu2 %v250_v4 }
  0x55   : > { %427 = vmatmul.f32.gmra.mxu3 %v251_v5 }
  0x56   : > { %340 = vmatmul.f32.gmra.mxu0 %v250_v4 }
  0x57   : > { %369 = vmatmul.f32.gmra.mxu1 %v251_v5 }
  0x5c   : > { %401 = vmatmul.f32.gmra.mxu2 %v252_v6 }
  0x5d   : > { %430 = vmatmul.f32.gmra.mxu3 %v253_v7 }
  0x5e   : > { %343 = vmatmul.f32.gmra.mxu0 %v252_v6 }
  0x5f   : > { %372 = vmatmul.f32.gmra.mxu1 %v253_v7 }
  0xc3   : > { %v335_v8 = vpop.f32.mrf.mxu0 }
  0xc4   : > { %v364_v9 = vpop.f32.mrf.mxu1 }
  0xc5   : > { %v365_v10 = vadd.f32 %v364_v9, %v335_v8 }
  0xc7   : > { %v393_v11 = vpop.f32.mrf.mxu2  ;;  %461 = vst [vmem:[%s992_s17] sm:$0xff] %v365_v10 }
  0xc8   : > { %v422_v12 = vpop.f32.mrf.mxu3 }
  0xc9   : > { %v423_v13 = vadd.f32 %v422_v12, %v393_v11 }
  0xcb   : > { %462 = vst [vmem:[%s992_s17 + $0x8] sm:$0xff] %v423_v13  ;;  %v338_v14 = vpop.f32.mrf.mxu0 }
  0xcc   : > { %v367_v15 = vpop.f32.mrf.mxu1 }
  0xcd   : > { %v368_v16 = vadd.f32 %v367_v15, %v338_v14 }
  0xcf   : > { %v396_v17 = vpop.f32.mrf.mxu2  ;;  %463 = vst [vmem:[%s992_s17 + $0x10] sm:$0xff] %v368_v16 }
  0xd0   : > { %v425_v18 = vpop.f32.mrf.mxu3 }
  0xd1   : > { %v426_v19 = vadd.f32 %v425_v18, %v396_v17 }
  0xd3   : > { %464 = vst [vmem:[%s992_s17 + $0x18] sm:$0xff] %v426_v19  ;;  %v341_v20 = vpop.f32.mrf.mxu0 }
  0xd4   : > { %v370_v21 = vpop.f32.mrf.mxu1 }
  0xd5   : > { %v371_v22 = vadd.f32 %v370_v21, %v341_v20 }
  0xd7   : > { %v399_v23 = vpop.f32.mrf.mxu2  ;;  %465 = vst [vmem:[%s992_s17 + $0x20] sm:$0xff] %v371_v22 }
  0xd8   : > { %v428_v24 = vpop.f32.mrf.mxu3 }
  0xd9   : > { %v429_v25 = vadd.f32 %v428_v24, %v399_v23 }
  0xdb   : > { %466 = vst [vmem:[%s992_s17 + $0x28] sm:$0xff] %v429_v25  ;;  %v344_v26 = vpop.f32.mrf.mxu0 }
  0xdc   : > { %v373_v27 = vpop.f32.mrf.mxu1 }
  0xdd   : > { %v374_v28 = vadd.f32 %v373_v27, %v344_v26 }
  0xdf   : > { %v402_v29 = vpop.f32.mrf.mxu2  ;;  %467 = vst [vmem:[%s992_s17 + $0x30] sm:$0xff] %v374_v28 }
  0xe0   : > { %v431_v30 = vpop.f32.mrf.mxu3 }
  0xe1   : > { %v432_v31 = vadd.f32 %v431_v30, %v402_v29 }
  0xe3   : > { %468 = vst [vmem:[%s992_s17 + $0x38] sm:$0xff] %v432_v31 }
  0xe4   : > { %780 = shalt.err (!%p777_p0)
}
  0xe5   : > { %s844_s30 = smov 256   ;;  %s845_s5 = smov 16  }
  0xe6   : > { %622 = dma.vmem_to_hbm [thread:$0]  (%p943_p5), %s486_s6, 1024, %s488_s15, %s470_s12, %s844_s30, %s844_s30, %s845_s5  }
  0xe7 PF: > { %s502_s7 = sand.u32 1, %s819_s9   ;;  %p633_p3 = pnand %p597_p11, %p910_p6 }
  0xe8   : > { %s503_s3 = scalar_lea.sflag [#allocation5], %s502_s7 }
  0xe9   : > { %p634_p7 = pneg %p633_p3 }
  0xeb   : > { %814 = dma.done.wait (%p634_p7), %s503_s3, 1024  }
  0xec   : > { %816 = vsyncadd (%p634_p7), %s503_s3, 4294966272  ;;  %s19_s14 = sadd.s32 1, %s839_s14   ;;  %s1051_s9 = smov %s823_s10 }
  0xed   : > { %p16_p9 = scmp.ge.s32.totalorder %s19_s14, 4   ;;  %s1052_s10 = smov %s827_s11 }
  0xee   : > { %s1053_s11 = smov %s952_s8  ;;  %s1054_s12 = smov %s835_s13 }
  0xef   : > { %s1055_s13 = smov %s1057_s29  ;;  %18 = sbr.rel (!%p16_p9) target bundleno = 7 (0x7), region = 86 }
  0xf4   :  { %509 = vsyncpa [#allocation4], 1 }
  0xf5   :  { %511 = vsyncpa [#allocation4 + $0x1], 1 }
  0xf6   :  { %512 = vsyncpa [#allocation7], 1 }
  0xf7   :  { %513 = vsyncpa [#allocation5], 1 }
  0xf8   :  { %515 = vsyncpa [#allocation5 + $0x1], 1 }

</bundles_post_ra>
